<compile_context>
chip_gen: v5e
topology: v5e:2x2
jax: 0.10.0
libtpu: 0.0.40
codegen_flags: <defaults>
</compile_context>

<pallas_src>
import math

import jax
import jax.numpy as jnp
from jax import lax
from jax.experimental import pallas as pl
from jax.experimental.pallas import tpu as pltpu
from jax.scipy.special import erf as _jax_erf


_INV_SQRT2 = 0.7071067811865476


def _erf_approx(x):
    """Abramowitz & Stegun 7.1.26 rational erf approximation, |err| <= 1.5e-7 (~f32 eps).

    Uses only exp/mul/add/where so it lowers to VPU/EUP ops on every TPU generation.
    # TODO(synk): switch to jax.lax.erf if/when Mosaic erf lowering is guaranteed.
    """
    p = 0.3275911
    a1, a2, a3, a4, a5 = (0.254829592, -0.284496736, 1.421413741,
                          -1.453152027, 1.061405429)
    ax = jnp.abs(x)
    t = 1.0 / (1.0 + p * ax)
    poly = ((((a5 * t + a4) * t + a3) * t + a2) * t + a1) * t
    y = 1.0 - poly * jnp.exp(-ax * ax)
    return jnp.where(x < 0, -y, y)


def _gelu_exact(x):
    # x * 0.5 * (1 + erf(x / sqrt(2)))  -- the exact-erf BERT gelu (not the tanh approx)
    return 0.5 * x * (1.0 + _erf_approx(x * _INV_SQRT2))


def _head_transform_kernel(x_ref, wt_ref, b_ref, gamma_ref, beta_ref, o_ref):
    # Dense: x @ W^T + b  (MXU, f32 accumulation regardless of input dtype)
    y = jnp.dot(x_ref[...], wt_ref[...], preferred_element_type=jnp.float32)
    y = y + b_ref[...].astype(jnp.float32)
    # Activation: exact-erf GELU, f32
    y = _gelu_exact(y)
    # LayerNorm over the last axis, eps = 1e-12 (f32 stats: two XLU reductions,
    # rsqrt on the EUP so the epilogue hides under the next tile's MXU work)
    mean = jnp.mean(y, axis=-1, keepdims=True)
    centered = y - mean
    var = jnp.mean(centered * centered, axis=-1, keepdims=True)
    normed = centered * lax.rsqrt(var + 1e-12)
    out = normed * gamma_ref[...].astype(jnp.float32) + beta_ref[...].astype(jnp.float32)
    o_ref[...] = out.astype(o_ref.dtype)


def bert_prediction_head_transform(hidden_states, weight, bias, gamma, beta,
                                   *, block_m=256, matmul_dtype=None):
    """hidden_states: [..., H]; weight: [H, H] (torch nn.Linear [out, in]);
    bias / gamma / beta: [H].

    block_m: rows per grid step.  256 keeps BERT-large f32 well inside the default
      32 MiB scoped VMEM (resident ~4 MiB weight + double-buffered ~1 MiB x/out
      tiles); shrink it (or pass matmul_dtype=jnp.bfloat16) for tighter budgets
      such as v7x's 64 MiB physical VMEM with larger configs.
    matmul_dtype: optional cast of x / weight for the MXU (e.g. jnp.bfloat16 on
      v6e/v7x); bias + GELU + LayerNorm always run in f32.
    """
    orig_shape = hidden_states.shape
    H = orig_shape[-1]
    out_dtype = hidden_states.dtype

    x = hidden_states.reshape(-1, H)
    M = x.shape[0]

    # One-time transpose to [H_in, H_out]; hoist out of the hot path (keep a
    # pre-transposed weight in model state) when calling repeatedly.
    wt = weight.T

    if matmul_dtype is not None:
        x = x.astype(matmul_dtype)
        wt = wt.astype(matmul_dtype)

    # Row tile: multiple of 8 (sublane) when tiling; pad M so the grid divides.
    tm = min(block_m, M)
    if tm < M:
        tm = max(8, (tm // 8) * 8)
    grid_m = (M + tm - 1) // tm
    m_pad = grid_m * tm
    if m_pad != M:
        x = jnp.pad(x, ((0, m_pad - M), (0, 0)))

    b2 = bias.reshape(1, H).astype(jnp.float32)
    g2 = gamma.reshape(1, H).astype(jnp.float32)
    be2 = beta.reshape(1, H).astype(jnp.float32)

    itemsize = jnp.dtype(out_dtype).itemsize
    cost = pl.CostEstimate(
        flops=2 * m_pad * H * H,
        transcendentals=m_pad * H,  # one exp per element (erf)
        bytes_accessed=(x.size * x.dtype.itemsize
                        + wt.size * wt.dtype.itemsize
                        + m_pad * H * itemsize
                        + 3 * H * 4),
    )

    out = pl.pallas_call(
        _head_transform_kernel,
        out_shape=jax.ShapeDtypeStruct((m_pad, H), out_dtype),
        grid_spec=pltpu.PrefetchScalarGridSpec(
            num_scalar_prefetch=0,
            grid=(grid_m,),
            in_specs=[
                pl.BlockSpec((tm, H), lambda i: (i, 0)),   # x: streamed row tiles
                pl.BlockSpec((H, H), lambda i: (0, 0)),    # weight: VMEM-resident
                pl.BlockSpec((1, H), lambda i: (0, 0)),    # bias: resident
                pl.BlockSpec((1, H), lambda i: (0, 0)),    # gamma: resident
                pl.BlockSpec((1, H), lambda i: (0, 0)),    # beta: resident
            ],
            out_specs=pl.BlockSpec((tm, H), lambda i: (i, 0)),
        ),
        compiler_params=pltpu.CompilerParams(
            dimension_semantics=("parallel",)),  # independent row tiles -> megacore
        cost_estimate=cost,
    )(x, wt, b2, g2, be2)

    if m_pad != M:
        out = out[:M]
    return out.reshape(orig_shape)


def bert_prediction_head_transform_ref(hidden_states, weight, bias, gamma, beta):
    y = jnp.einsum("...i,hi->...h", hidden_states, weight) + bias
    y = 0.5 * y * (1.0 + _jax_erf(y / math.sqrt(2.0)))
    mean = jnp.mean(y, axis=-1, keepdims=True)
    var = jnp.mean((y - mean) ** 2, axis=-1, keepdims=True)
    return (y - mean) / jnp.sqrt(var + 1e-12) * gamma + beta


if __name__ == "__main__":
    # Small config with a lane-aligned hidden size: batch=2, seq=8, hidden=128.
    B, S, H = 2, 8, 128

    key = jax.random.PRNGKey(0)
    k1, k2, k3, k4, k5 = jax.random.split(key, 5)

    hidden_states = jax.random.normal(k1, (B, S, H), dtype=jnp.float32)
    weight = jax.random.normal(k2, (H, H), dtype=jnp.float32) * 0.05  # nn.Linear [out, in]
    bias = jax.random.normal(k3, (H,), dtype=jnp.float32) * 0.05      # nn.Linear bias
    gamma = 1.0 + 0.1 * jax.random.normal(k4, (H,), dtype=jnp.float32)  # LayerNorm weight
    beta = 0.1 * jax.random.normal(k5, (H,), dtype=jnp.float32)         # LayerNorm bias

    # block_m=8 -> grid of 2 row tiles, exercising the pipelined "parallel" grid.
    out = bert_prediction_head_transform(hidden_states, weight, bias, gamma, beta,
                                         block_m=8)
    out = jax.block_until_ready(out)

    ref = bert_prediction_head_transform_ref(hidden_states, weight, bias, gamma, beta)
    assert out.shape == (B, S, H)
    assert jnp.allclose(out, ref, atol=2e-5, rtol=2e-5), (
        "mismatch vs reference: max abs err "
        f"{jnp.max(jnp.abs(out - ref))}")

    print("KERNEL_OK")
</pallas_src>

<mosaic_0001>
module attributes {stable_mosaic.version = 11 : i64} {
  func.func @_head_transform_kernel(%arg0: i32, %arg1: memref<8x128xf32, #tpu.memory_space<vmem>>, %arg2: memref<128x128xf32, #tpu.memory_space<vmem>>, %arg3: memref<1x128xf32, #tpu.memory_space<vmem>>, %arg4: memref<1x128xf32, #tpu.memory_space<vmem>>, %arg5: memref<1x128xf32, #tpu.memory_space<vmem>>, %arg6: memref<8x128xf32, #tpu.memory_space<vmem>>) attributes {dimension_semantics = [#tpu.dimension_semantics<parallel>], iteration_bounds = array<i64: 2>, scalar_prefetch = 0 : i64, scratch_operands = 0 : i64, tpu.core_type = #tpu.core_type<tc>, window_params = [{transform_indices = @transform_0, window_bounds = array<i64: 8, 128>}, {pipeline_mode = #tpu.pipeline_mode<synchronous>, transform_indices = @transform_1, window_bounds = array<i64: 128, 128>}, {pipeline_mode = #tpu.pipeline_mode<synchronous>, transform_indices = @transform_2, window_bounds = array<i64: 1, 128>}, {pipeline_mode = #tpu.pipeline_mode<synchronous>, transform_indices = @transform_3, window_bounds = array<i64: 1, 128>}, {pipeline_mode = #tpu.pipeline_mode<synchronous>, transform_indices = @transform_4, window_bounds = array<i64: 1, 128>}, {transform_indices = @transform_5, window_bounds = array<i64: 8, 128>}]} {
    %c0 = arith.constant 0 : index
    %c0_0 = arith.constant 0 : index
    %0 = vector.load %arg1[%c0, %c0_0] : memref<8x128xf32, #tpu.memory_space<vmem>>, vector<8x128xf32>
    %c0_1 = arith.constant 0 : index
    %c0_2 = arith.constant 0 : index
    %1 = vector.load %arg2[%c0_1, %c0_2] : memref<128x128xf32, #tpu.memory_space<vmem>>, vector<128x128xf32>
    %cst = arith.constant dense<0.000000e+00> : vector<8x128xf32>
    %2 = tpu.matmul %0, %1, %cst {dimension_numbers = #tpu.dot_dimension_numbers<[1], [0], [0], [1], [0, 0, 1, 1], [], []>} : vector<8x128xf32>, vector<128x128xf32>, vector<8x128xf32> -> vector<8x128xf32>
    %c0_3 = arith.constant 0 : index
    %c0_4 = arith.constant 0 : index
    %3 = vector.load %arg3[%c0_3, %c0_4] : memref<1x128xf32, #tpu.memory_space<vmem>>, vector<1x128xf32>
    %4 = vector.broadcast %3 : vector<1x128xf32> to vector<8x128xf32>
    %5 = arith.addf %2, %4 : vector<8x128xf32>
    %cst_5 = arith.constant 5.000000e-01 : f32
    %6 = vector.broadcast %cst_5 : f32 to vector<8x128xf32>
    %7 = arith.mulf %6, %5 : vector<8x128xf32>
    %cst_6 = arith.constant 0.707106769 : f32
    %8 = vector.broadcast %cst_6 : f32 to vector<8x128xf32>
    %9 = arith.mulf %5, %8 : vector<8x128xf32>
    %10 = math.absf %9 : vector<8x128xf32>
    %cst_7 = arith.constant 0.327591091 : f32
    %11 = vector.broadcast %cst_7 : f32 to vector<8x128xf32>
    %12 = arith.mulf %11, %10 : vector<8x128xf32>
    %cst_8 = arith.constant 1.000000e+00 : f32
    %13 = vector.broadcast %cst_8 : f32 to vector<8x128xf32>
    %14 = arith.addf %13, %12 : vector<8x128xf32>
    %cst_9 = arith.constant 1.000000e+00 : f32
    %15 = vector.broadcast %cst_9 : f32 to vector<8x128xf32>
    %16 = arith.divf %15, %14 : vector<8x128xf32>
    %cst_10 = arith.constant 1.06140542 : f32
    %17 = vector.broadcast %cst_10 : f32 to vector<8x128xf32>
    %18 = arith.mulf %17, %16 : vector<8x128xf32>
    %cst_11 = arith.constant -1.45315206 : f32
    %19 = vector.broadcast %cst_11 : f32 to vector<8x128xf32>
    %20 = arith.addf %18, %19 : vector<8x128xf32>
    %21 = arith.mulf %20, %16 : vector<8x128xf32>
    %cst_12 = arith.constant 1.42141378 : f32
    %22 = vector.broadcast %cst_12 : f32 to vector<8x128xf32>
    %23 = arith.addf %21, %22 : vector<8x128xf32>
    %24 = arith.mulf %23, %16 : vector<8x128xf32>
    %cst_13 = arith.constant -0.284496725 : f32
    %25 = vector.broadcast %cst_13 : f32 to vector<8x128xf32>
    %26 = arith.addf %24, %25 : vector<8x128xf32>
    %27 = arith.mulf %26, %16 : vector<8x128xf32>
    %cst_14 = arith.constant 0.254829586 : f32
    %28 = vector.broadcast %cst_14 : f32 to vector<8x128xf32>
    %29 = arith.addf %27, %28 : vector<8x128xf32>
    %30 = arith.mulf %29, %16 : vector<8x128xf32>
    %cst_15 = arith.constant 0.000000e+00 : f32
    %31 = vector.broadcast %cst_15 : f32 to vector<8x128xf32>
    %32 = arith.subf %31, %10 : vector<8x128xf32>
    %33 = arith.mulf %32, %10 : vector<8x128xf32>
    %34 = math.exp %33 : vector<8x128xf32>
    %35 = arith.mulf %30, %34 : vector<8x128xf32>
    %cst_16 = arith.constant 1.000000e+00 : f32
    %36 = vector.broadcast %cst_16 : f32 to vector<8x128xf32>
    %37 = arith.subf %36, %35 : vector<8x128xf32>
    %cst_17 = arith.constant 0.000000e+00 : f32
    %38 = vector.broadcast %cst_17 : f32 to vector<8x128xf32>
    %39 = arith.cmpf olt, %9, %38 : vector<8x128xf32>
    %cst_18 = arith.constant 0.000000e+00 : f32
    %40 = vector.broadcast %cst_18 : f32 to vector<8x128xf32>
    %41 = arith.subf %40, %37 : vector<8x128xf32>
    %42 = arith.select %39, %41, %37 : vector<8x128xi1>, vector<8x128xf32>
    %cst_19 = arith.constant 1.000000e+00 : f32
    %43 = vector.broadcast %cst_19 : f32 to vector<8x128xf32>
    %44 = arith.addf %43, %42 : vector<8x128xf32>
    %45 = arith.mulf %7, %44 : vector<8x128xf32>
    %cst_20 = arith.constant dense<0.000000e+00> : vector<8xf32>
    %46 = vector.multi_reduction <add>, %45, %cst_20 [1] : vector<8x128xf32> to vector<8xf32>
    %47 = vector.shape_cast %46 : vector<8xf32> to vector<8x1xf32>
    %cst_21 = arith.constant 1.280000e+02 : f32
    %48 = vector.broadcast %cst_21 : f32 to vector<8x1xf32>
    %49 = arith.divf %47, %48 : vector<8x1xf32>
    %50 = vector.broadcast %49 : vector<8x1xf32> to vector<8x128xf32>
    %51 = arith.subf %45, %50 : vector<8x128xf32>
    %52 = arith.mulf %51, %51 : vector<8x128xf32>
    %cst_22 = arith.constant dense<0.000000e+00> : vector<8xf32>
    %53 = vector.multi_reduction <add>, %52, %cst_22 [1] : vector<8x128xf32> to vector<8xf32>
    %54 = vector.shape_cast %53 : vector<8xf32> to vector<8x1xf32>
    %cst_23 = arith.constant 1.280000e+02 : f32
    %55 = vector.broadcast %cst_23 : f32 to vector<8x1xf32>
    %56 = arith.divf %54, %55 : vector<8x1xf32>
    %cst_24 = arith.constant 9.99999996E-13 : f32
    %57 = vector.broadcast %cst_24 : f32 to vector<8x1xf32>
    %58 = arith.addf %56, %57 : vector<8x1xf32>
    %59 = math.rsqrt %58 : vector<8x1xf32>
    %60 = vector.broadcast %59 : vector<8x1xf32> to vector<8x128xf32>
    %61 = arith.mulf %51, %60 : vector<8x128xf32>
    %c0_25 = arith.constant 0 : index
    %c0_26 = arith.constant 0 : index
    %62 = vector.load %arg4[%c0_25, %c0_26] : memref<1x128xf32, #tpu.memory_space<vmem>>, vector<1x128xf32>
    %63 = vector.broadcast %62 : vector<1x128xf32> to vector<8x128xf32>
    %64 = arith.mulf %61, %63 : vector<8x128xf32>
    %c0_27 = arith.constant 0 : index
    %c0_28 = arith.constant 0 : index
    %65 = vector.load %arg5[%c0_27, %c0_28] : memref<1x128xf32, #tpu.memory_space<vmem>>, vector<1x128xf32>
    %66 = vector.broadcast %65 : vector<1x128xf32> to vector<8x128xf32>
    %67 = arith.addf %64, %66 : vector<8x128xf32>
    %c0_29 = arith.constant 0 : index
    %c0_30 = arith.constant 0 : index
    %68 = vector.load %arg6[%c0_29, %c0_30] : memref<8x128xf32, #tpu.memory_space<vmem>>, vector<8x128xf32>
    tpu.vector_store %arg6[%c0_29, %c0_30], %67 {strides = array<i32>} : memref<8x128xf32, #tpu.memory_space<vmem>>, vector<8x128xf32>,
    return
  }
  func.func @transform_0(%arg0: i32) -> (i32, i32) {
    %c0_i32 = arith.constant 0 : i32
    %c0_i32_0 = arith.constant 0 : i32
    return %arg0, %c0_i32 : i32, i32
  }
  func.func @transform_1(%arg0: i32) -> (i32, i32) {
    %c0_i32 = arith.constant 0 : i32
    %c0_i32_0 = arith.constant 0 : i32
    %c0_i32_1 = arith.constant 0 : i32
    return %c0_i32, %c0_i32_0 : i32, i32
  }
  func.func @transform_2(%arg0: i32) -> (i32, i32) {
    %c0_i32 = arith.constant 0 : i32
    %c0_i32_0 = arith.constant 0 : i32
    %c0_i32_1 = arith.constant 0 : i32
    return %c0_i32, %c0_i32_0 : i32, i32
  }
  func.func @transform_3(%arg0: i32) -> (i32, i32) {
    %c0_i32 = arith.constant 0 : i32
    %c0_i32_0 = arith.constant 0 : i32
    %c0_i32_1 = arith.constant 0 : i32
    return %c0_i32, %c0_i32_0 : i32, i32
  }
  func.func @transform_4(%arg0: i32) -> (i32, i32) {
    %c0_i32 = arith.constant 0 : i32
    %c0_i32_0 = arith.constant 0 : i32
    %c0_i32_1 = arith.constant 0 : i32
    return %c0_i32, %c0_i32_0 : i32, i32
  }
  func.func @transform_5(%arg0: i32) -> (i32, i32) {
    %c0_i32 = arith.constant 0 : i32
    %c0_i32_0 = arith.constant 0 : i32
    return %arg0, %c0_i32 : i32, i32
  }
}

</mosaic_0001>

<bundles_post_ra>
// kernel: tpu_custom_call.1
= control target key start
LH: loop header
LB: loop body
LE: loop exit
PB: predicated region body
PF: predicated region fallthrough
CT: control target
= control target key end

     0   :  { %10 = vsyncpa [#allocation3], 0  ;;  %s877_s0 = inlined_call_operand.hbm [shape: f32[16,128], index: 0, kind: input, shape index: {}]   ;;  %s878_s1 = inlined_call_operand.hbm [shape: f32[128,128], index: 1, kind: input, shape index: {}]   ;;  %s879_s2 = inlined_call_operand.vmem [shape: f32[1,128], index: 2, kind: input, shape index: {}]   ;;  %s880_s3 = inlined_call_operand.vmem [shape: f32[1,128], index: 3, kind: input, shape index: {}]   ;;  %s881_s4 = inlined_call_operand.vmem [shape: f32[1,128], index: 4, kind: input, shape index: {}]   ;;  %s882_s5 = inlined_call_operand.hbm [shape: f32[16,128], index: 5, kind: output, shape index: {}]  }
   0x1   :  { %12 = vsyncpa [#allocation3 + $0x1], 0 }
   0x2   :  { %13 = vsyncpa [#allocation6], 0 }
   0x3   :  { %14 = vsyncpa [#allocation4], 0 }
   0x4   :  { %16 = vsyncpa [#allocation4 + $0x1], 0  ;;  %s725_s18 = smov 0   ;;  %s727_s19 = smov 0  }
   0x5   :  { %s729_s20 = smov 0   ;;  %s731_s21 = smov 0  }
   0x6 LB: > { %s174_s24 = sshll.u32 %s878_s1, 4  ;;  %s749_s25 = sadd.s32 4294967295, %s689_s21   ;;  %s689_s21 = sphi %s731_s21, %s892_s21   ;;  %s685_s20 = sphi %s729_s20, %s891_s20   ;;  %s681_s19 = sphi %s727_s19, %s890_s19   ;;  %s677_s18 = sphi %s725_s18, %s889_s18   ;;  %s175_s24 = int_to_ptr.hbm [resolvable:$true] %s174_s24 }
   0x7   : > { %p475_p0 = scmp.ge.s32.totalorder %s689_s21, 1  ;;  %p43_p1 = scmp.eq.s32.totalorder %s749_s25, 0 }
   0x8   : > { %p163_p2 = scmp.lt.s32.totalorder %s689_s21, 3  ;;  %s691_s27 = smov [#allocation5]  }
   0x9   : > { %s176_s28 = sshll.u32 %s691_s27, 4  ;;  %s692_s29 = smov 128   ;;  %s177_s28 = int_to_ptr.vmem [resolvable:$true] %s176_s28 }
   0xa   : > { %p754_p3 = pnand %p475_p0, %p163_p2  ;;  %s693_s30 = smov 8  }
   0xb   : > { %s474_s6 = sadd.s32 4294967294, %s689_s21   ;;  %s765_s7 = sadd.s32 1, %s689_s21  }
   0xc   : > { %p496_p4 = pneg %p754_p3  ;;  %s29_s8 = sadd.s32 1, %s685_s20 }
   0xd   : > { %s26_s9 = ssub.s32 %s689_s21, %s765_s7  ;;  %p36_p7 = scmp.ne.s32.totalorder %s685_s20, %s681_s19 }
   0xe   : > { %p497_p6 = pnand %p496_p4, %p43_p1  ;;  %p27_p8 = scmp.eq.s32.totalorder %s26_s9, 0 }
   0xf   : > { %p37_p9 = scmp.eq.s32.totalorder %s689_s21, 0  ;;  %p42_p10 = scmp.ne.s32.totalorder %s681_s19, %s677_s18 }
  0x10   : > { %499 = dma.hbm_to_vmem [thread:$0]  (!%p497_p6), %s175_s24, 2048, %s177_s28, [#allocation6], %s692_s29, %s692_s29, %s693_s30  }
  0x11   : > { %p150_p11 = scmp.eq.s32.totalorder %s749_s25, 1  ;;  %p781_p12 = por %p43_p1, %p42_p10 }
  0x12   : > { %s777_s10 = scalar_select %p27_p8, %s685_s20, %s29_s8  }
  0x13   : > { %p785_p13 = por %p150_p11, %p36_p7  ;;  %p156_p0 = scmp.eq.s32.totalorder %s474_s6, 1 }
  0x14   : > { %p38_p2 = por %p37_p9, %p36_p7  ;;  %s199_s13 = sand.u32 1, %s685_s20  }
  0x15   : > { %p790_p4 = por %p156_p0, %p42_p10  ;;  %p509_p6 = scmp.lt.s32.totalorder %s689_s21, 2 }
  0x16   : > { %s478_s15 = sshll.u32 %s199_s13, 3  ;;  %s479_s16 = sshll.u32 %s689_s21, 3 }
  0x17   : > { %s207_s23 = scalar_lea.hbm %s877_s0, %s479_s16  ;;  %s203_s27 = scalar_lea.vmem [#allocation2], %s478_s15 }
  0x18   : > { %s209_s24 = sshll.u32 %s207_s23, 4  ;;  %s211_s28 = sshll.u32 %s203_s27, 4  ;;  %s210_s24 = int_to_ptr.hbm [resolvable:$true] %s209_s24  ;;  %s212_s28 = int_to_ptr.vmem [resolvable:$true] %s211_s28 }
  0x19   : > { %p799_p8 = pnand %p509_p6, %p38_p2  ;;  %s200_s30 = scalar_lea.sflag [#allocation3], %s199_s13 }
  0x1a   : > { %s589_s6 = sshra.s32 %s210_s24, 4  ;;  %s596_s15 = scalar_lea.hbm %s877_s0, 16  ;;  %s590_s6 = int_to_ptr.hbm [resolvable:$true] %s589_s6 }
  0x1b   : > { %s591_s8 = scalar_lea.hbm %s590_s6, 8  ;;  %p593_p9 = pneg %p799_p8 }
  0x1c   : > { %p592_p7 = scmp.ne.s32.totalorder %s590_s6, %s591_s8  ;;  %p597_p0 = scmp.lt.s32.totalorder %s590_s6, %s877_s0 }
  0x1d   : > { %p598_p2 = scmp.lt.s32.totalorder %s596_s15, %s591_s8 }
  0x1e   : > { %p594_p10 = pnand %p593_p9, %p592_p7 }
  0x1f   : > { %p599_p6 = por %p598_p2, %p597_p0 }
  0x20   : > { %p595_p11 = pneg %p594_p10 }
  0x22   : > { %p600_p5 = pnand %p599_p6, %p595_p11 }
  0x24   : > { %603 = shalt.err (!%p600_p5)
}
  0x25   : > { %503 = dma.hbm_to_vmem [thread:$0]  (!%p799_p8), %s210_s24, 128, %s212_s28, %s200_s30  }
  0x26   : > { %220 = sbr.rel (%p754_p3) target bundleno = 529 (0x211), region = 40  ;;  %s816_s13 = sand.u32 (!%p754_p3), 1, %s681_s19  }
  0x27   : > { %s481_s23 = sshll.u32 (!%p754_p3), %s816_s13, 3  ;;  %s223_s27 = scalar_lea.sflag (!%p754_p3), [#allocation3], %s816_s13 }
  0x28   : > { %s822_s6 = scalar_lea.vmem (!%p754_p3), [#allocation2], %s481_s23 }
  0x2b   : > { %664 = dma.done.wait (%p781_p12), %s223_s27, 128  }
  0x2c   : > { %666 = vsyncadd (%p781_p12), %s223_s27, 4294967168 }
  0x2d   : > { %668 = dma.done.wait (%p43_p1), [#allocation6], 2048  }
  0x2e   : > { %670 = vsyncadd (%p43_p1), [#allocation6], 4294965248  ;;  %v275_v0 = vld [vmem:[#allocation5 + $0x78] sm:$0xff]  ;;  %v274_v1 = vld [vmem:[#allocation5 + $0x70] sm:$0xff]  ;;  %v694_v54 = vmov 128.0   ;;  %s485_s24 = sshll.u32 %s749_s25, 3 }
  0x2f   : > { %280 = vmatpush.msra.mxu0 %v275_v0  ;;  %v273_v2 = vld [vmem:[#allocation5 + $0x68] sm:$0xff]  ;;  %v272_v3 = vld [vmem:[#allocation5 + $0x60] sm:$0xff]  ;;  %v271_v4 = vld [vmem:[#allocation5 + $0x58] sm:$0xff]  ;;  %s389_s9 = scalar_lea.hbm %s882_s5, %s485_s24  ;;  %s258_s25 = scalar_lea.vmem [#allocation7], %s481_s23 }
  0x30   : > { %v270_v5 = vld [vmem:[#allocation5 + $0x50] sm:$0xff]  ;;  %v269_v6 = vld [vmem:[#allocation5 + $0x48] sm:$0xff]  ;;  %v268_v7 = vld [vmem:[#allocation5 + $0x40] sm:$0xff]  ;;  %s391_s17 = sshll.u32 %s258_s25, 4  ;;  %s393_s22 = sshll.u32 %s389_s9, 4  ;;  %s392_s17 = int_to_ptr.vmem [resolvable:$true] %s391_s17  ;;  %s394_s22 = int_to_ptr.hbm [resolvable:$true] %s393_s22 }
  0x31   : > { %281 = vmatpush.msra.mxu0 %v274_v1  ;;  %v267_v8 = vld [vmem:[#allocation5 + $0x38] sm:$0xff]  ;;  %v266_v9 = vld [vmem:[#allocation5 + $0x30] sm:$0xff]  ;;  %v265_v10 = vld [vmem:[#allocation5 + $0x28] sm:$0xff]  ;;  %s379_s27 = scalar_lea.sflag [#allocation4], %s816_s13  ;;  %s639_s28 = scalar_lea.hbm %s882_s5, 16 }
  0x32   : > { %v264_v11 = vld [vmem:[#allocation5 + $0x20] sm:$0xff]  ;;  %v263_v12 = vld [vmem:[#allocation5 + $0x18] sm:$0xff]  ;;  %v262_v13 = vld [vmem:[#allocation5 + $0x10] sm:$0xff] }
  0x33   : > { %282 = vmatpush.msra.mxu0 %v273_v2  ;;  %v261_v14 = vld [vmem:[#allocation5 + $0x8] sm:$0xff]  ;;  %v260_v15 = vld [vmem:[#allocation5] sm:$0xff]  ;;  %v259_v16 = vld [vmem:[%s822_s6] sm:$0xff]  ;;  %s633_s6 = sshra.s32 %s394_s22, 4  ;;  %s634_s6 = int_to_ptr.hbm [resolvable:$true] %s633_s6 }
  0x34   : > { %v548_v17 = vld [vmem:[%s879_s2] ss:$0 sm:$0xff]  ;;  %s635_s26 = scalar_lea.hbm %s634_s6, 8  ;;  %p640_p12 = scmp.lt.s32.totalorder %s634_s6, %s882_s5 }
  0x35   : > { %283 = vmatpush.msra.mxu0 %v272_v3  ;;  %p636_p1 = scmp.ne.s32.totalorder %s634_s6, %s635_s26  ;;  %p641_p8 = scmp.lt.s32.totalorder %s639_s28, %s635_s26 }
  0x37   : > { %284 = vmatpush.msra.mxu0 %v271_v4  ;;  %p637_p3 = pnand %p636_p1, %p785_p13  ;;  %p642_p7 = por %p641_p8, %p640_p12 }
  0x39   : > { %285 = vmatpush.msra.mxu0 %v270_v5  ;;  %p638_p5 = pneg %p637_p3 }
  0x3b   : > { %286 = vmatpush.msra.mxu0 %v269_v6  ;;  %p643_p9 = pnand %p642_p7, %p638_p5 }
  0x3d   : > { %287 = vmatpush.msra.mxu0 %v268_v7 }
  0x3f   : > { %288 = vmatpush.msra.mxu0 %v267_v8 }
  0x41   : > { %289 = vmatpush.msra.mxu0 %v266_v9 }
  0x43   : > { %290 = vmatpush.msra.mxu0 %v265_v10  ;;  %v549_v10 = vld [vmem:[%s880_s3] ss:$0 sm:$0xff] }
  0x45   : > { %291 = vmatpush.msra.mxu0 %v264_v11 }
  0x47   : > { %292 = vmatpush.msra.mxu0 %v263_v12 }
  0x49   : > { %293 = vmatpush.msra.mxu0 %v262_v13  ;;  %v550_v13 = vld [vmem:[%s881_s4] ss:$0 sm:$0xff] }
  0x4b   : > { %294 = vmatpush.msra.mxu0 %v261_v14 }
  0x4d   : > { %295 = vmatpush.msra.mxu0 %v260_v15 }
  0x4e   : > { %296 = vmatmul.f32.vlgmr.msra.gmra.mxu0 %v259_v16 }
  0xcb   : > { %v297_v18 = vpop.f32.mrf.mxu0 }
  0xcc   : > { %v298_v19 = vadd.f32 %v548_v17, %v297_v18 }
  0xce   : > { %v301_v20 = vmul.f32 0.70710677, %v298_v19  ;;  %v300_v51 = vmul.f32 0.5, %v298_v19 }
  0xd0   : > { %v302_v21 = vand.u32 2147483647, %v301_v20  ;;  %vm335_vm4 = vcmp.lt.f32.partialorder %v301_v20, 0.0 }
  0xd2   : > { %v303_v22 = vmul.f32 0.3275911, %v302_v21  ;;  %v329_v33 = vsub.f32 0.0, %v302_v21 }
  0xd4   : > { %v304_v23 = vadd.f32 1.0, %v303_v22  ;;  %v330_v37 = vmul.f32 %v329_v33, %v302_v21 }
  0xd6   : > { %551 = vrcp.f32 %v304_v23  ;;  %v316_v27 = vand.u32 2147483648, %v304_v23  ;;  %v314_v29 = vand.u32 2147483647, %v304_v23  ;;  %vm310_vm1 = vweird.f32 %v304_v23 }
  0xd7   : > { %v331_v40 = vmul.f32 1.442695, %v330_v37 }
  0xd8   : > { %v317_v31 = vor.u32 1.1754944e-38, %v316_v27  ;;  %vm315_vm3 = vcmp.eq.f32.partialorder %v314_v29, 8.507059e+37 }
  0xd9   : > { %553 = vpow2.f32 %v331_v40 }
  0xda   : > { %555 = vrcp.f32 %v694_v54 }
  0xdc   : > { %v552_v24 = vpop.eup %551 }
  0xdd   : > { %v306_v25 = vmul.f32 %v552_v24, %v304_v23  ;;  %vm311_vm0 = vweird.f32 %v552_v24 }
  0xde   : > { %vm312_vm2 = vmor %vm310_vm1, %vm311_vm0 }
  0xdf   : > { %v307_v26 = vsub.f32 1.0, %v306_v25  ;;  %v554_v46 = vpop.eup %553 }
  0xe0   : > { %v556_v55 = vpop.eup %555 }
  0xe1   : > { %v308_v28 = vmul.f32 %v552_v24, %v307_v26  ;;  %v343_v56 = vmul.f32 128.0, %v556_v55  ;;  %vm347_vm5 = vweird.f32 %v556_v55 }
  0xe3   : > { %v309_v30 = vadd.f32 %v552_v24, %v308_v28  ;;  %v344_v57 = vsub.f32 1.0, %v343_v56 }
  0xe5   : > { %v313_v32 = vsel %vm312_vm2, %v552_v24, %v309_v30  ;;  %v345_v58 = vmul.f32 %v556_v55, %v344_v57 }
  0xe6   : > { %v318_v34 = vsel %vm315_vm3, %v317_v31, %v313_v32 }
  0xe7   : > { %v320_v35 = vmul.f32 1.0614054, %v318_v34  ;;  %v346_v59 = vadd.f32 %v556_v55, %v345_v58 }
  0xe9   : > { %v321_v36 = vadd.f32 -1.4531521, %v320_v35  ;;  %v348_v60 = vsel %vm347_vm5, %v556_v55, %v346_v59 }
  0xeb   : > { %v322_v38 = vmul.f32 %v321_v36, %v318_v34 }
  0xed   : > { %v323_v39 = vadd.f32 1.4214138, %v322_v38 }
  0xef   : > { %v324_v41 = vmul.f32 %v323_v39, %v318_v34 }
  0xf1   : > { %v325_v42 = vadd.f32 -0.28449672, %v324_v41 }
  0xf3   : > { %v326_v43 = vmul.f32 %v325_v42, %v318_v34 }
  0xf5   : > { %v327_v44 = vadd.f32 0.2548296, %v326_v43 }
  0xf7   : > { %v328_v45 = vmul.f32 %v327_v44, %v318_v34 }
  0xf9   : > { %v333_v47 = vmul.f32 %v554_v46, %v328_v45 }
  0xfb   : > { %v334_v48 = vsub.f32 1.0, %v333_v47 }
  0xfd   : > { %v336_v49 = vsub.f32 0.0, %v334_v48 }
  0xff   : > { %v337_v50 = vsel %vm335_vm4, %v336_v49, %v334_v48 }
 0x100   : > { %v338_v52 = vadd.f32 1.0, %v337_v50 }
 0x102   : > { %v339_v53 = vmul.f32 %v338_v52, %v300_v51 }
 0x104   : > { %340 = vadd.xlane.f32.xlu0 %v339_v53 }
 0x177   : > { %v341_v61 = vpop.xlane.xlu0 %340 }
 0x178   : > { %v349_v62 = vmul.f32 %v348_v60, %v341_v61 }
 0x17a   : > { %v350_v63 = vsub.f32 %v339_v53, %v349_v62 }
 0x17c   : > { %v351_v0 = vmul.f32 %v350_v63, %v350_v63 }
 0x17e   : > { %352 = vadd.xlane.f32.xlu0 %v351_v0 }
 0x1f1   : > { %v353_v1 = vpop.xlane.xlu0 %352 }
 0x1f2   : > { %v354_v2 = vmul.f32 %v353_v1, %v348_v60 }
 0x1f4   : > { %v355_v3 = vadd.f32 1e-12, %v354_v2 }
 0x1f6   : > { %557 = vrsqrt.f32 %v355_v3  ;;  %vm362_vm7 = vweird.f32 %v355_v3 }
 0x1fc   : > { %v558_v4 = vpop.eup %557 }
 0x1fd   : > { %v357_v5 = vmul.f32 %v558_v4, %v355_v3  ;;  %vm363_vm6 = vweird.f32 %v558_v4 }
 0x1fe   : > { %vm364_vm8 = vmor %vm362_vm7, %vm363_vm6 }
 0x1ff   : > { %v358_v6 = vmul.f32 %v558_v4, %v357_v5 }
 0x201   : > { %v359_v7 = vmul.f32 0.5, %v358_v6 }
 0x203   : > { %v360_v8 = vsub.f32 1.5, %v359_v7 }
 0x205   : > { %v361_v9 = vmul.f32 %v558_v4, %v360_v8 }
 0x207   : > { %v365_v11 = vsel %vm364_vm8, %v558_v4, %v361_v9 }
 0x208   : > { %v366_v12 = vmul.f32 %v365_v11, %v350_v63 }
 0x20a   : > { %v371_v14 = vmul.f32 %v549_v10, %v366_v12 }
 0x20c   : > { %v376_v15 = vadd.f32 %v550_v13, %v371_v14 }
 0x20e   : > { %377 = vst [vmem:[%s258_s25] sm:$0xff] %v376_v15 }
 0x20f   : > { %646 = shalt.err (!%p643_p9)
}
 0x210   : > { %494 = dma.vmem_to_hbm [thread:$0]  (%p785_p13), %s392_s17, 128, %s394_s22, %s379_s27  }
 0x211 PF: > { %s405_s13 = sand.u32 1, %s677_s18   ;;  %p888_p10 = scmp.ge.s32.totalorder %s689_s21, 2 }
 0x212   : > { %s406_s30 = scalar_lea.sflag [#allocation4], %s405_s13 }
 0x213   : > { %p505_p11 = pnand %p888_p10, %p790_p4 }
 0x215   : > { %p506_p0 = pneg %p505_p11 }
 0x217   : > { %672 = dma.done.wait (%p506_p0), %s406_s30, 128  }
 0x218   : > { %674 = vsyncadd (%p506_p0), %s406_s30, 4294967168  ;;  %p19_p2 = scmp.ge.s32.totalorder %s765_s7, 4   ;;  %s889_s18 = smov %s681_s19 }
 0x219   : > { %s890_s19 = smov %s685_s20  ;;  %s891_s20 = smov %s777_s10 }
 0x21a   : > { %s892_s21 = smov %s765_s7  ;;  %21 = sbr.rel (!%p19_p2) target bundleno = 6 (0x6), region = 89 }
 0x21f   :  { %412 = vsyncpa [#allocation3], 1 }
 0x220   :  { %414 = vsyncpa [#allocation3 + $0x1], 1 }
 0x221   :  { %415 = vsyncpa [#allocation6], 1 }
 0x222   :  { %416 = vsyncpa [#allocation4], 1 }
 0x223   :  { %418 = vsyncpa [#allocation4 + $0x1], 1 }

</bundles_post_ra>
